<compile_context>
chip_gen: v7x
topology: tpu7x:2x2x1
jax: 0.10.0
libtpu: 0.0.40
codegen_flags: <defaults>
</compile_context>

<pallas_src>
import jax
import jax.numpy as jnp
from jax.experimental import pallas as pl
from jax.experimental.pallas import tpu as pltpu


def _round_up(n, m):
    return ((n + m - 1) // m) * m


def _make_kernel(latent_dim: int, vpu_head: bool):
    def kernel(x_ref, eps_ref,
               w1_ref, b1_ref,
               wml_ref, bml_ref,
               wr1_ref, br1_ref,
               wr2_ref, br2_ref,
               out_ref):
        f32 = jnp.float32
        bf16 = jnp.bfloat16

        x = x_ref[...]          # (TILE_B, in_dim)  f32
        eps = eps_ref[...]      # (TILE_B, latent)  f32

        # ---- VAE encoder (frozen / eval). bf16 MXU operands, f32 accumulate.
        h = jnp.dot(x.astype(bf16), w1_ref[...],
                    preferred_element_type=f32) + b1_ref[...]
        h = jnp.maximum(h, 0.0)

        # Fused mu/logvar projection: one MXU launch at N = 2*latent.
        ml = jnp.dot(h.astype(bf16), wml_ref[...],
                     preferred_element_type=f32) + bml_ref[...]
        mu = ml[:, :latent_dim]
        logvar = ml[:, latent_dim:]

        # Reparameterization (EUP exp, all f32): z = mu + sigma * eps
        z = mu + jnp.exp(0.5 * logvar) * eps

        # ---- Regressor ----
        r = jnp.dot(z.astype(bf16), wr1_ref[...],
                    preferred_element_type=f32) + br1_ref[...]
        r = jnp.maximum(r, 0.0)

        if vpu_head:
            # out_dim == 1: MXU matmul to N=1 would be >99% padded columns.
            # Use VPU multiply + lane (XLU) reduction instead.
            # wr2_ref holds Wr2^T with shape (1, reg_hidden), f32.
            out = jnp.sum(r * wr2_ref[...], axis=-1, keepdims=True) + br2_ref[...]
        else:
            out = jnp.dot(r.astype(bf16), wr2_ref[...],
                          preferred_element_type=f32) + br2_ref[...]

        out_ref[...] = out.astype(out_ref.dtype)

    return kernel


def m1_forward(x, eps, params, *, tile_b=None):
    """Fused M1_model forward.

    params = (w1, b1, wmu, bmu, wlv, blv, wr1, br1, wr2, br2)
    Weights are [in_features, out_features]; biases are (1, out_features).
    """
    (w1, b1, wmu, bmu, wlv, blv, wr1, br1, wr2, br2) = params
    batch, in_dim = x.shape
    latent_dim = wmu.shape[1]
    out_dim = wr2.shape[1]

    # --- parameter prep (once per call, outside the kernel) ---
    wml = jnp.concatenate([wmu, wlv], axis=1)        # [enc_hidden, 2*latent]
    bml = jnp.concatenate([bmu, blv], axis=1)        # [1, 2*latent]

    # bf16 MXU operands (f32 accumulation inside the kernel); biases stay f32.
    w1_k = w1.astype(jnp.bfloat16)
    wml_k = wml.astype(jnp.bfloat16)
    wr1_k = wr1.astype(jnp.bfloat16)

    vpu_head = (out_dim == 1)
    if vpu_head:
        wr2_k = wr2.T.astype(jnp.float32)            # (1, reg_hidden), VPU path
    else:
        wr2_k = wr2.astype(jnp.bfloat16)             # (reg_hidden, out_dim)

    # --- batch tiling: pad batch to a multiple of the tile so every block is
    #     exactly (TILE_B, features) and the (8,128) block constraint holds. ---
    if tile_b is None:
        tile_b = min(256, _round_up(batch, 8))
    padded = _round_up(batch, tile_b)
    if padded != batch:
        x = jnp.pad(x, ((0, padded - batch), (0, 0)))
        eps = jnp.pad(eps, ((0, padded - batch), (0, 0)))
    n_tiles = padded // tile_b

    def batch_spec(d):
        return pl.BlockSpec((tile_b, d), lambda i: (i, 0))

    def full_spec(shape):
        # Constant block index -> weight stays resident in VMEM (no re-DMA).
        return pl.BlockSpec(shape, lambda i: (0, 0))

    in_specs = [
        batch_spec(in_dim),          # x
        batch_spec(latent_dim),      # eps
        full_spec(w1_k.shape),       # W1
        full_spec(b1.shape),         # b1
        full_spec(wml_k.shape),      # [Wmu | Wlv] fused
        full_spec(bml.shape),        # [bmu | blv] fused
        full_spec(wr1_k.shape),      # Wr1
        full_spec(br1.shape),        # br1
        full_spec(wr2_k.shape),      # Wr2 (transposed if out_dim == 1)
        full_spec(br2.shape),        # br2
    ]

    out = pl.pallas_call(
        _make_kernel(latent_dim, vpu_head),
        out_shape=jax.ShapeDtypeStruct((padded, out_dim), jnp.float32),
        grid=(n_tiles,),
        in_specs=in_specs,
        out_specs=pl.BlockSpec((tile_b, out_dim), lambda i: (i, 0)),
        compiler_params=pltpu.CompilerParams(
            dimension_semantics=("parallel",)),      # megacore on v7x
    )(x, eps, w1_k, b1, wml_k, bml, wr1_k, br1, wr2_k, br2)

    return out[:batch]


def init_params(key, in_dim, enc_hidden, latent_dim, reg_hidden, out_dim):
    ks = jax.random.split(key, 5)

    def lin(k, fan_in, fan_out):
        w = jax.random.normal(k, (fan_in, fan_out), jnp.float32) / jnp.sqrt(fan_in)
        b = jnp.zeros((1, fan_out), jnp.float32)
        return w, b

    w1, b1 = lin(ks[0], in_dim, enc_hidden)
    wmu, bmu = lin(ks[1], enc_hidden, latent_dim)
    wlv, blv = lin(ks[2], enc_hidden, latent_dim)
    wr1, br1 = lin(ks[3], latent_dim, reg_hidden)
    wr2, br2 = lin(ks[4], reg_hidden, out_dim)
    return (w1, b1, wmu, bmu, wlv, blv, wr1, br1, wr2, br2)


def reference_forward(x, eps, params):
    """Plain-JAX reference using the same bf16-operand / f32-accumulate dots."""
    (w1, b1, wmu, bmu, wlv, blv, wr1, br1, wr2, br2) = params
    bf16, f32 = jnp.bfloat16, jnp.float32

    h = jnp.dot(x.astype(bf16), w1.astype(bf16), preferred_element_type=f32) + b1
    h = jnp.maximum(h, 0.0)
    mu = jnp.dot(h.astype(bf16), wmu.astype(bf16), preferred_element_type=f32) + bmu
    logvar = jnp.dot(h.astype(bf16), wlv.astype(bf16), preferred_element_type=f32) + blv
    z = mu + jnp.exp(0.5 * logvar) * eps
    r = jnp.dot(z.astype(bf16), wr1.astype(bf16), preferred_element_type=f32) + br1
    r = jnp.maximum(r, 0.0)
    return jnp.dot(r, wr2) + br2        # f32 regression head


if __name__ == "__main__":
    # Small shapes consistent with an MLP VAE + scalar regressor.
    batch, in_dim, enc_hidden, latent_dim, reg_hidden, out_dim = 8, 32, 32, 16, 32, 1

    key = jax.random.PRNGKey(0)
    k_x, k_eps, k_p = jax.random.split(key, 3)

    x = jax.random.normal(k_x, (batch, in_dim), jnp.float32)
    eps = jax.random.normal(k_eps, (batch, latent_dim), jnp.float32)
    params = init_params(k_p, in_dim, enc_hidden, latent_dim, reg_hidden, out_dim)

    out = m1_forward(x, eps, params)
    jax.block_until_ready(out)

    ref = reference_forward(x, eps, params)
    assert out.shape == (batch, out_dim)
    err = jnp.max(jnp.abs(out - ref))
    assert jnp.allclose(out, ref, atol=1e-3, rtol=1e-3), f"mismatch vs reference, max abs err {err:.3e}"

    print("KERNEL_OK")
</pallas_src>

<mosaic_0001>
module attributes {stable_mosaic.version = 11 : i64} {
  func.func @kernel(%arg0: i32, %arg1: memref<8x32xf32, #tpu.memory_space<vmem>>, %arg2: memref<8x16xf32, #tpu.memory_space<vmem>>, %arg3: memref<32x32xbf16, #tpu.memory_space<vmem>>, %arg4: memref<1x32xf32, #tpu.memory_space<vmem>>, %arg5: memref<32x32xbf16, #tpu.memory_space<vmem>>, %arg6: memref<1x32xf32, #tpu.memory_space<vmem>>, %arg7: memref<16x32xbf16, #tpu.memory_space<vmem>>, %arg8: memref<1x32xf32, #tpu.memory_space<vmem>>, %arg9: memref<1x32xf32, #tpu.memory_space<vmem>>, %arg10: memref<1x1xf32, #tpu.memory_space<vmem>>, %arg11: memref<8x1xf32, #tpu.memory_space<vmem>>) attributes {dimension_semantics = [#tpu.dimension_semantics<parallel>], iteration_bounds = array<i64: 1>, scalar_prefetch = 0 : i64, scratch_operands = 0 : i64, tpu.core_type = #tpu.core_type<tc>, window_params = [{transform_indices = @transform_0, window_bounds = array<i64: 8, 32>}, {transform_indices = @transform_1, window_bounds = array<i64: 8, 16>}, {pipeline_mode = #tpu.pipeline_mode<synchronous>, transform_indices = @transform_2, window_bounds = array<i64: 32, 32>}, {pipeline_mode = #tpu.pipeline_mode<synchronous>, transform_indices = @transform_3, window_bounds = array<i64: 1, 32>}, {pipeline_mode = #tpu.pipeline_mode<synchronous>, transform_indices = @transform_4, window_bounds = array<i64: 32, 32>}, {pipeline_mode = #tpu.pipeline_mode<synchronous>, transform_indices = @transform_5, window_bounds = array<i64: 1, 32>}, {pipeline_mode = #tpu.pipeline_mode<synchronous>, transform_indices = @transform_6, window_bounds = array<i64: 16, 32>}, {pipeline_mode = #tpu.pipeline_mode<synchronous>, transform_indices = @transform_7, window_bounds = array<i64: 1, 32>}, {pipeline_mode = #tpu.pipeline_mode<synchronous>, transform_indices = @transform_8, window_bounds = array<i64: 1, 32>}, {pipeline_mode = #tpu.pipeline_mode<synchronous>, transform_indices = @transform_9, window_bounds = array<i64: 1, 1>}, {transform_indices = @transform_10, window_bounds = array<i64: 8, 1>}]} {
    %c0 = arith.constant 0 : index
    %c0_0 = arith.constant 0 : index
    %0 = vector.load %arg1[%c0, %c0_0] : memref<8x32xf32, #tpu.memory_space<vmem>>, vector<8x32xf32>
    %c0_1 = arith.constant 0 : index
    %c0_2 = arith.constant 0 : index
    %1 = vector.load %arg2[%c0_1, %c0_2] : memref<8x16xf32, #tpu.memory_space<vmem>>, vector<8x16xf32>
    %2 = arith.truncf %0 : vector<8x32xf32> to vector<8x32xbf16>
    %c0_3 = arith.constant 0 : index
    %c0_4 = arith.constant 0 : index
    %3 = vector.load %arg3[%c0_3, %c0_4] : memref<32x32xbf16, #tpu.memory_space<vmem>>, vector<32x32xbf16>
    %cst = arith.constant dense<0.000000e+00> : vector<8x32xf32>
    %4 = tpu.matmul %2, %3, %cst {dimension_numbers = #tpu.dot_dimension_numbers<[1], [0], [0], [1], [0, 0, 1, 1], [], []>} : vector<8x32xbf16>, vector<32x32xbf16>, vector<8x32xf32> -> vector<8x32xf32>
    %c0_5 = arith.constant 0 : index
    %c0_6 = arith.constant 0 : index
    %5 = vector.load %arg4[%c0_5, %c0_6] : memref<1x32xf32, #tpu.memory_space<vmem>>, vector<1x32xf32>
    %6 = vector.broadcast %5 : vector<1x32xf32> to vector<8x32xf32>
    %7 = arith.addf %4, %6 : vector<8x32xf32>
    %cst_7 = arith.constant 0.000000e+00 : f32
    %8 = vector.broadcast %cst_7 : f32 to vector<8x32xf32>
    %9 = arith.maximumf %7, %8 : vector<8x32xf32>
    %10 = arith.truncf %9 : vector<8x32xf32> to vector<8x32xbf16>
    %c0_8 = arith.constant 0 : index
    %c0_9 = arith.constant 0 : index
    %11 = vector.load %arg5[%c0_8, %c0_9] : memref<32x32xbf16, #tpu.memory_space<vmem>>, vector<32x32xbf16>
    %cst_10 = arith.constant dense<0.000000e+00> : vector<8x32xf32>
    %12 = tpu.matmul %10, %11, %cst_10 {dimension_numbers = #tpu.dot_dimension_numbers<[1], [0], [0], [1], [0, 0, 1, 1], [], []>} : vector<8x32xbf16>, vector<32x32xbf16>, vector<8x32xf32> -> vector<8x32xf32>
    %c0_11 = arith.constant 0 : index
    %c0_12 = arith.constant 0 : index
    %13 = vector.load %arg6[%c0_11, %c0_12] : memref<1x32xf32, #tpu.memory_space<vmem>>, vector<1x32xf32>
    %14 = vector.broadcast %13 : vector<1x32xf32> to vector<8x32xf32>
    %15 = arith.addf %12, %14 : vector<8x32xf32>
    %16 = vector.extract_strided_slice %15 {offsets = [0, 0], sizes = [8, 16], strides = [1, 1]} : vector<8x32xf32> to vector<8x16xf32>
    %17 = vector.extract_strided_slice %15 {offsets = [0, 16], sizes = [8, 16], strides = [1, 1]} : vector<8x32xf32> to vector<8x16xf32>
    %cst_13 = arith.constant 5.000000e-01 : f32
    %18 = vector.broadcast %cst_13 : f32 to vector<8x16xf32>
    %19 = arith.mulf %18, %17 : vector<8x16xf32>
    %20 = math.exp %19 : vector<8x16xf32>
    %21 = arith.mulf %20, %1 : vector<8x16xf32>
    %22 = arith.addf %16, %21 : vector<8x16xf32>
    %23 = arith.truncf %22 : vector<8x16xf32> to vector<8x16xbf16>
    %c0_14 = arith.constant 0 : index
    %c0_15 = arith.constant 0 : index
    %24 = vector.load %arg7[%c0_14, %c0_15] : memref<16x32xbf16, #tpu.memory_space<vmem>>, vector<16x32xbf16>
    %cst_16 = arith.constant dense<0.000000e+00> : vector<8x32xf32>
    %25 = tpu.matmul %23, %24, %cst_16 {dimension_numbers = #tpu.dot_dimension_numbers<[1], [0], [0], [1], [0, 0, 1, 1], [], []>} : vector<8x16xbf16>, vector<16x32xbf16>, vector<8x32xf32> -> vector<8x32xf32>
    %c0_17 = arith.constant 0 : index
    %c0_18 = arith.constant 0 : index
    %26 = vector.load %arg8[%c0_17, %c0_18] : memref<1x32xf32, #tpu.memory_space<vmem>>, vector<1x32xf32>
    %27 = vector.broadcast %26 : vector<1x32xf32> to vector<8x32xf32>
    %28 = arith.addf %25, %27 : vector<8x32xf32>
    %cst_19 = arith.constant 0.000000e+00 : f32
    %29 = vector.broadcast %cst_19 : f32 to vector<8x32xf32>
    %30 = arith.maximumf %28, %29 : vector<8x32xf32>
    %c0_20 = arith.constant 0 : index
    %c0_21 = arith.constant 0 : index
    %31 = vector.load %arg9[%c0_20, %c0_21] : memref<1x32xf32, #tpu.memory_space<vmem>>, vector<1x32xf32>
    %32 = vector.broadcast %31 : vector<1x32xf32> to vector<8x32xf32>
    %33 = arith.mulf %30, %32 : vector<8x32xf32>
    %cst_22 = arith.constant dense<0.000000e+00> : vector<8xf32>
    %34 = vector.multi_reduction <add>, %33, %cst_22 [1] : vector<8x32xf32> to vector<8xf32>
    %35 = vector.shape_cast %34 : vector<8xf32> to vector<8x1xf32>
    %c0_23 = arith.constant 0 : index
    %c0_24 = arith.constant 0 : index
    %36 = vector.load %arg10[%c0_23, %c0_24] : memref<1x1xf32, #tpu.memory_space<vmem>>, vector<1x1xf32>
    %37 = vector.broadcast %36 : vector<1x1xf32> to vector<8x1xf32>
    %38 = arith.addf %35, %37 : vector<8x1xf32>
    %c0_25 = arith.constant 0 : index
    %c0_26 = arith.constant 0 : index
    %39 = vector.load %arg11[%c0_25, %c0_26] : memref<8x1xf32, #tpu.memory_space<vmem>>, vector<8x1xf32>
    tpu.vector_store %arg11[%c0_25, %c0_26], %38 {strides = array<i32>} : memref<8x1xf32, #tpu.memory_space<vmem>>, vector<8x1xf32>,
    return
  }
  func.func @transform_0(%arg0: i32) -> (i32, i32) {
    %c0_i32 = arith.constant 0 : i32
    %c0_i32_0 = arith.constant 0 : i32
    return %arg0, %c0_i32 : i32, i32
  }
  func.func @transform_1(%arg0: i32) -> (i32, i32) {
    %c0_i32 = arith.constant 0 : i32
    %c0_i32_0 = arith.constant 0 : i32
    return %arg0, %c0_i32 : i32, i32
  }
  func.func @transform_2(%arg0: i32) -> (i32, i32) {
    %c0_i32 = arith.constant 0 : i32
    %c0_i32_0 = arith.constant 0 : i32
    %c0_i32_1 = arith.constant 0 : i32
    return %c0_i32, %c0_i32_0 : i32, i32
  }
  func.func @transform_3(%arg0: i32) -> (i32, i32) {
    %c0_i32 = arith.constant 0 : i32
    %c0_i32_0 = arith.constant 0 : i32
    %c0_i32_1 = arith.constant 0 : i32
    return %c0_i32, %c0_i32_0 : i32, i32
  }
  func.func @transform_4(%arg0: i32) -> (i32, i32) {
    %c0_i32 = arith.constant 0 : i32
    %c0_i32_0 = arith.constant 0 : i32
    %c0_i32_1 = arith.constant 0 : i32
    return %c0_i32, %c0_i32_0 : i32, i32
  }
  func.func @transform_5(%arg0: i32) -> (i32, i32) {
    %c0_i32 = arith.constant 0 : i32
    %c0_i32_0 = arith.constant 0 : i32
    %c0_i32_1 = arith.constant 0 : i32
    return %c0_i32, %c0_i32_0 : i32, i32
  }
  func.func @transform_6(%arg0: i32) -> (i32, i32) {
    %c0_i32 = arith.constant 0 : i32
    %c0_i32_0 = arith.constant 0 : i32
    %c0_i32_1 = arith.constant 0 : i32
    return %c0_i32, %c0_i32_0 : i32, i32
  }
  func.func @transform_7(%arg0: i32) -> (i32, i32) {
    %c0_i32 = arith.constant 0 : i32
    %c0_i32_0 = arith.constant 0 : i32
    %c0_i32_1 = arith.constant 0 : i32
    return %c0_i32, %c0_i32_0 : i32, i32
  }
  func.func @transform_8(%arg0: i32) -> (i32, i32) {
    %c0_i32 = arith.constant 0 : i32
    %c0_i32_0 = arith.constant 0 : i32
    %c0_i32_1 = arith.constant 0 : i32
    return %c0_i32, %c0_i32_0 : i32, i32
  }
  func.func @transform_9(%arg0: i32) -> (i32, i32) {
    %c0_i32 = arith.constant 0 : i32
    %c0_i32_0 = arith.constant 0 : i32
    %c0_i32_1 = arith.constant 0 : i32
    return %c0_i32, %c0_i32_0 : i32, i32
  }
  func.func @transform_10(%arg0: i32) -> (i32, i32) {
    %c0_i32 = arith.constant 0 : i32
    %c0_i32_0 = arith.constant 0 : i32
    return %arg0, %c0_i32 : i32, i32
  }
}

</mosaic_0001>

<bundles_post_ra>
// kernel: tpu_custom_call.1
= control target key start
LH: loop header
LB: loop body
LE: loop exit
PB: predicated region body
PF: predicated region fallthrough
CT: control target
= control target key end

     0   :  { %s573_s0 = inlined_call_operand.hbm [shape: f32[8,32], index: 0, kind: input, shape index: {}]   ;;  %s574_s1 = inlined_call_operand.hbm [shape: f32[8,16], index: 1, kind: input, shape index: {}]   ;;  %s575_s2 = inlined_call_operand.hbm [shape: bf16[32,32], index: 2, kind: input, shape index: {}]   ;;  %s576_s3 = inlined_call_operand.vmem [shape: f32[1,32], index: 3, kind: input, shape index: {}]   ;;  %s577_s4 = inlined_call_operand.vmem [shape: bf16[32,32], index: 4, kind: input, shape index: {}]   ;;  %s578_s5 = inlined_call_operand.vmem [shape: f32[1,32], index: 5, kind: input, shape index: {}]   ;;  %s579_s6 = inlined_call_operand.vmem [shape: bf16[16,32], index: 6, kind: input, shape index: {}]   ;;  %s580_s7 = inlined_call_operand.vmem [shape: f32[1,32], index: 7, kind: input, shape index: {}]   ;;  %s581_s8 = inlined_call_operand.vmem [shape: f32[1,32], index: 8, kind: input, shape index: {}]   ;;  %s582_s9 = inlined_call_operand.<no memory space> [shape: f32[1,1], index: 9, kind: input, shape index: {}]   ;;  %s583_s10 = inlined_call_operand.vmem [shape: f32[8,1], index: 10, kind: output, shape index: {}]  }
   0x1   :  { %v15_v0 = vstv %s582_s9 }
   0x2   :  { %16 = vst [vmem:[#allocation2] sm:$0x1] %v15_v0 }
   0x3   :  { %17 = vsyncpa [#allocation4], 0 }
   0x4   :  { %18 = vsyncpa [#allocation6], 0  ;;  %s443_s15 = smov [#allocation5]   ;;  %s444_s17 = smov [#allocation3]  }
   0x5   :  { %s35_s16 = sshll.u32 %s443_s15, 4  ;;  %s25_s18 = sshll.u32 %s444_s17, 4  ;;  %s36_s16 = int_to_ptr.vmem [resolvable:$true] %s35_s16  ;;  %s26_s18 = int_to_ptr.vmem [resolvable:$true] %s25_s18 }
   0x6   :  { %s373_s21 = scalar_lea.hbm %s574_s1, 128 }
   0x7   :  { %p374_p0 = scmp.ne.s32.totalorder %s574_s1, %s373_s21  ;;  %p377_p1 = scmp.lt.u32.totalorder %s373_s21, %s574_s1 }
   0x9   :  { %p379_p2 = pnand %p377_p1, %p374_p0 }
   0xb   :  { %382 = shalt.err (!%p379_p2)
}
   0xc   :  { %s383_s9 = scalar_lea.vmem %s36_s16, 128  ;;  %p388_p4 = scmp.lt.s32.totalorder %s36_s16, %s36_s16 }
   0xd   :  { %p384_p3 = scmp.ne.s32.totalorder %s36_s16, %s383_s9  ;;  %p389_p5 = scmp.lt.s32.totalorder %s383_s9, %s383_s9 }
   0xf   :  { %p390_p6 = por %p389_p5, %p388_p4 }
  0x11   :  { %p391_p7 = pnand %p390_p6, %p384_p3 }
  0x13   :  { %394 = shalt.err (!%p391_p7)
}
  0x14   :  { %38 = dma.hbm_to_vmem [thread:$0]  %s574_s1, 128, %s36_s16, [#allocation6]  }
  0x15   :  { %s395_s30 = scalar_lea.hbm %s573_s0, 128 }
  0x16   :  { %p396_p8 = scmp.ne.s32.totalorder %s573_s0, %s395_s30  ;;  %p399_p9 = scmp.lt.u32.totalorder %s395_s30, %s573_s0 }
  0x18   :  { %p401_p10 = pnand %p399_p9, %p396_p8 }
  0x1a   :  { %404 = shalt.err (!%p401_p10)
}
  0x1b   :  { %s405_s15 = scalar_lea.vmem %s26_s18, 128  ;;  %p410_p12 = scmp.lt.s32.totalorder %s26_s18, %s26_s18 }
  0x1c   :  { %p406_p11 = scmp.ne.s32.totalorder %s26_s18, %s405_s15  ;;  %p411_p13 = scmp.lt.s32.totalorder %s405_s15, %s405_s15 }
  0x1e   :  { %p412_p0 = por %p411_p13, %p410_p12 }
  0x20   :  { %p413_p1 = pnand %p412_p0, %p406_p11 }
  0x22   :  { %416 = shalt.err (!%p413_p1)
}
  0x23   :  { %28 = dma.hbm_to_vmem [thread:$0]  %s573_s0, 128, %s26_s18, [#allocation4]  }
  0x24   :  { %s445_s17 = smov [#allocation7]   ;;  %s417_s22 = scalar_lea.hbm %s575_s2, 256 }
  0x25   :  { %s44_s19 = sshll.u32 %s445_s17, 4  ;;  %p418_p2 = scmp.ne.s32.totalorder %s575_s2, %s417_s22  ;;  %s45_s19 = int_to_ptr.vmem [resolvable:$true] %s44_s19 }
  0x26   :  { %p421_p3 = scmp.lt.u32.totalorder %s417_s22, %s575_s2 }
  0x28   :  { %p423_p4 = pnand %p421_p3, %p418_p2 }
  0x2a   :  { %426 = shalt.err (!%p423_p4)
}
  0x2b   :  { %s427_s26 = scalar_lea.vmem %s45_s19, 256  ;;  %p432_p6 = scmp.lt.s32.totalorder %s45_s19, %s45_s19 }
  0x2c   :  { %p428_p5 = scmp.ne.s32.totalorder %s45_s19, %s427_s26  ;;  %p433_p7 = scmp.lt.s32.totalorder %s427_s26, %s427_s26 }
  0x2e   :  { %p434_p8 = por %p433_p7, %p432_p6 }
  0x30   :  { %p435_p9 = pnand %p434_p8, %p428_p5 }
  0x32   :  { %438 = shalt.err (!%p435_p9)
}
  0x33   :  { %s446_s0 = smov 64   ;;  %s447_s18 = smov 4  }
  0x34   :  { %50 = dma.hbm_to_vmem [thread:$0]  %s575_s2, 256, %s45_s19, [#allocation6], %s446_s0, %s446_s0, %s447_s18  }
  0x35   :  { %439 = dma.done.wait [#allocation4], 128  }
  0x36   :  { %440 = vsyncadd [#allocation4], 4294967168 }
  0x37   :  { %441 = dma.done.wait [#allocation6], 384  }
  0x38   :  { %442 = vsyncadd [#allocation6], 4294966912  ;;  %v448_v1 = vmov 0.0   ;;  %vm449_vm0 = vmmov 0   ;;  %v366_v2 = vld [vmem:[#allocation7] sm:$0xff]   ;;  %v367_v3 = vld [vmem:[#allocation7 + $0x8] sm:$0xff]  }
  0x39   :  { %335 = vmatprep.subr.bf16.mxu0 %v448_v1  ;;  %339 = vmatprep.mubr.msk.bf16.mxu0 %vm449_vm0, %v448_v1  ;;  %v75_v4 = vld [vmem:[#allocation3] sm:$0xff]  ;;  %vm101_vm1 = vcmask 261120   ;;  %v76_v8 = vld [vmem:[#allocation5] sm:$0xff]  ;;  %s450_s12 = smov 16   ;;  %v314_v9 = vld [vmem:[%s576_s3] ss:$0 sm:$0xff] }
  0x3a   :  { %343 = vmatprep.subr.bf16.mxu1 %v448_v1  ;;  %347 = vmatprep.mubr.msk.bf16.mxu1 %vm449_vm0, %v448_v1  ;;  %v77_v5 = vpack.c.bf16 %v75_v4, %v75_v4  ;;  %v368_v6 = vld [vmem:[%s577_s4] sm:$0xff]   ;;  %v369_v7 = vld [vmem:[%s577_s4 + $0x8] sm:$0xff]   ;;  %s451_s3 = smov 112   ;;  %vm242_vm2 = vcmask 130048   ;;  %vm306_vm3 = vcmask 7168  }
  0x3b   :  { %336 = vmatpush3.bf16.msra.mxu0 %v366_v2  ;;  %344 = vmatpush3.bf16.msra.mxu1 %v368_v6  ;;  %v370_v17 = vld [vmem:[%s579_s6] sm:$0xff]  }
  0x3c   :  { %337 = vmatprep.subr.bf16.mxu0 %v448_v1  ;;  %345 = vmatprep.subr.bf16.mxu1 %v448_v1  ;;  %v318_v18 = vld [vmem:[%s578_s5] ss:$0 sm:$0xff] }
  0x3d   :  { %217 = vrot.lane.b32.xlu0 %v76_v8, %s450_s12  ;;  %v322_v32 = vld [vmem:[%s580_s7] ss:$0 sm:$0xff] }
  0x3e   :  { %v325_v37 = vld [vmem:[%s581_s8] ss:$0 sm:$0xff] }
  0x3f   :  { %338 = vmatpush3.bf16.msra.mxu0 %v367_v3  ;;  %346 = vmatpush3.bf16.msra.mxu1 %v369_v7  ;;  %v326_v42 = vld [vmem:[#allocation2] ss:$0 sm:$0xff] }
  0x40   :  { %351 = vmatprep.subr.bf16.mxu0 %v448_v1 }
  0x42   :  { %340 = vmatmul.mubr.msk.bf16.vlgmr.msra.gmra.mrb[0].mxu0 %vm101_vm1, %v77_v5 }
  0x43   :  { %353 = vmatprep.mubr.msk.bf16.mxu0 %vm449_vm0, %v448_v1  ;;  %352 = vmatpush3.bf16.msra.mxu0 %v370_v17 }
  0xaf   :  { %v218_v26 = vpop.permute.xlu0 %217 }
 0x115   :  { %v139_v10 = vpop.f32.mrb[0].mxu0 }
 0x116   :  { %v140_v11 = vadd.f32 %v314_v9, %v139_v10  ;;  %v341_v12 = vpop.f32.mrb[1].mxu0 }
 0x117   :  { %v142_v13 = vpop.f32.mrb[2].mxu0 }
 0x118   :  { %v145_v14 = vmax.f32 %v140_v11, 0.0  ;;  %v342_v15 = vpop.f32.mrb[3].mxu0 }
 0x11a   :  { %v146_v16 = vpack.c.bf16 %v145_v14, %v145_v14 }
 0x11c   :  { %348 = vmatmul.mubr.msk.bf16.vlgmr.msra.gmra.mrb[0].mxu1 %vm101_vm1, %v146_v16 }
 0x1ef   :  { %v207_v19 = vpop.f32.mrb[0].mxu1 }
 0x1f0   :  { %v208_v20 = vadd.f32 %v318_v18, %v207_v19  ;;  %v349_v21 = vpop.f32.mrb[1].mxu1 }
 0x1f1   :  { %v210_v22 = vpop.f32.mrb[2].mxu1 }
 0x1f2   :  { %v213_v23 = vmul.f32 0.5, %v208_v20  ;;  %v350_v24 = vpop.f32.mrb[3].mxu1 }
 0x1f4   :  { %v214_v25 = vmul.f32 1.442695, %v213_v23 }
 0x1f6   :  { %371 = vpow2.f32 %v214_v25 }
 0x200   :  { %v372_v27 = vpop.eup %371 }
 0x201   :  { %v220_v28 = vmul.f32 %v372_v27, %v218_v26 }
 0x203   :  { %222 = vrot.lane.b32.xlu0 %v220_v28, %s451_s3 }
 0x275   :  { %v223_v29 = vpop.permute.xlu0 %222 }
 0x276   :  { %v225_v30 = vadd.f32 %v223_v29, %v208_v20 }
 0x278   :  { %v226_v31 = vpack.c.bf16 %v225_v30, %v225_v30 }
 0x27a   :  { %354 = vmatmul.mubr.msk.bf16.vlgmr.msra.gmra.mrb[4].mxu0 %vm242_vm2, %v226_v31 }
 0x34d   :  { %v280_v33 = vpop.f32.mrb[4].mxu0 }
 0x34e   :  { %v281_v34 = vadd.f32 %v322_v32, %v280_v33  ;;  %v355_v35 = vpop.f32.mrb[5].mxu0 }
 0x34f   :  { %v283_v36 = vpop.f32.mrb[6].mxu0 }
 0x350   :  { %v286_v38 = vmax.f32 %v281_v34, 0.0  ;;  %v356_v39 = vpop.f32.mrb[7].mxu0 }
 0x352   :  { %v294_v40 = vmul.f32 %v325_v37, %v286_v38 }
 0x354   :  { %v295_v41 = vsel %vm101_vm1, %v294_v40, 0.0 }
 0x355   :  { %296 = vadd.xlane.f32.xlu1 %v295_v41 }
 0x3e2   :  { %v297_v43 = vpop.xlane.xlu1 %296 }
 0x3e3   :  { %v305_v44 = vadd.f32 %v326_v42, %v297_v43 }
 0x3e5   :  { %307 = vst.msk [vmem:[%s583_s10] sm:$0xff] %vm306_vm3, %v305_v44 }
 0x3e6   :  { %312 = vsyncpa [#allocation4], 1 }
 0x3e7   :  { %313 = vsyncpa [#allocation6], 1 }

</bundles_post_ra>
